<compile_context>
chip_gen: v7x
topology: tpu7x:2x2x1
jax: 0.10.0
libtpu: 0.0.40
codegen_flags: <defaults>
</compile_context>

<pallas_src>
import functools

import jax
import jax.numpy as jnp
from jax.experimental import pallas as pl
from jax.experimental.pallas import tpu as pltpu


def _resblock_kernel(eps,
                     x_ref, g1_ref, b1_ref, g2_ref, b2_ref,
                     r_ref, p_ref, a1_ref, a2_ref,
                     o_ref):
    """Fused ResBlock forward for Bt batch elements, lane-dense (Bt*H, W*C) rows."""
    Bt, H, L = x_ref.shape
    M = Bt * H

    R = r_ref[...]          # (M, M) f32: 1 iff rows belong to the same batch image
    P = p_ref[...]          # (L, L) f32: 1/n iff lanes share a group (n = H*L/G)

    xf = x_ref[...].astype(jnp.float32).reshape(M, L)

    row = jax.lax.broadcasted_iota(jnp.int32, (M, 1), 0)
    top_row = (row % H) == 0            # first image row of each batch element
    bot_row = (row % H) == (H - 1)      # last image row of each batch element

    def group_norm_silu(v, gamma, beta):
        # v: (M, L) f32.  Per-(batch, group) stats via two full-width matmuls:
        #   R @ v   -> per-batch column sums replicated on every row
        #   (...) @ P -> per-group lane average (the 1/n is baked into P)
        mean = jnp.dot(jnp.dot(R, v, preferred_element_type=jnp.float32), P,
                       preferred_element_type=jnp.float32)                 # (M, L)
        vc = v - mean
        var = jnp.dot(jnp.dot(R, vc * vc, preferred_element_type=jnp.float32), P,
                      preferred_element_type=jnp.float32)                  # (M, L)
        scale = jax.lax.rsqrt(var + eps) * gamma                           # (M, L)
        bias = beta - mean * scale
        y = v * scale + bias
        # SiLU: y * sigmoid(y) with sigmoid(y) = 0.5*tanh(0.5*y) + 0.5 (one EUP op).
        return y * (0.5 * jnp.tanh(0.5 * y) + 0.5)

    def conv3x3(act, w_ref):
        # 'same' 3x3 conv as ONE (M, 3L) @ (3L, L) MXU matmul.  The three
        # K-chunks are the activation shifted by -1 / 0 / +1 image rows (the
        # H-direction 'same' zero padding); the W-direction shift/padding and
        # the channel mixing are baked into the (3L, L) lane-mixing weights.
        # Shifts are value-level (VPU/XLU) so the MXU sees one aligned operand;
        # the iota masks stop rows leaking across batch-element boundaries.
        zrow = jnp.zeros((1, L), jnp.float32)
        down = jnp.where(top_row, 0.0,
                         jnp.concatenate([zrow, act[:M - 1, :]], axis=0))
        up = jnp.where(bot_row, 0.0,
                       jnp.concatenate([act[1:, :], zrow], axis=0))
        lhs = jnp.concatenate([down, act, up], axis=1).astype(jnp.bfloat16)  # (M, 3L)
        return jnp.dot(lhs, w_ref[...], preferred_element_type=jnp.float32)  # (M, L)

    h = conv3x3(group_norm_silu(xf, g1_ref[...], b1_ref[...]), a1_ref)
    h = group_norm_silu(h, g2_ref[...], b2_ref[...])
    # Dropout(p=0.0) == identity.
    h = conv3x3(h, a2_ref)
    # Residual: re-read x from VMEM instead of keeping it live across both convs.
    res = x_ref[...].astype(jnp.float32).reshape(M, L)
    o_ref[...] = (h + res).reshape(Bt, H, L).astype(o_ref.dtype)


def _lane_conv_weights(w, W):
    """(Cout, Cin, 3, 3) conv weights -> (3, W*Cin, W*Cout) bf16 lane-mixing mats.

    A[ky, wi*Cin + ci, wo*Cout + co] = w[co, ci, ky, wi - wo + 1] when
    |wi - wo| <= 1, else 0 (encodes the W-direction 'same' zero padding).
    """
    Cout, Cin, KH, KW = w.shape
    wt = jnp.transpose(w, (2, 3, 1, 0))                        # (KH, KW, Cin, Cout)
    kx = jnp.arange(W)[:, None] - jnp.arange(W)[None, :] + 1   # wi - wo + 1, (W, W)
    valid = (kx >= 0) & (kx < KW)
    a = wt[:, jnp.clip(kx, 0, KW - 1)]                         # (KH, wi, wo, Cin, Cout)
    a = jnp.where(valid[None, :, :, None, None], a, 0.0)
    a = jnp.transpose(a, (0, 1, 3, 2, 4))                      # (KH, wi, Cin, wo, Cout)
    return a.reshape(KH, W * Cin, W * Cout).astype(jnp.bfloat16)


def _pick_batch_tile(B, H, max_rows=256):
    """Largest divisor Bt of B with Bt*H <= max_rows (fills the MXU M dimension)."""
    best = 1
    for bt in range(1, B + 1):
        if B % bt == 0 and bt * H <= max_rows:
            best = bt
    return best


def resblock_forward(x_nchw, gamma1, beta1, gamma2, beta2, w1, w2, *, groups, eps):
    """x_nchw: (B, C, H, W) float32.  w1, w2: (Cout, Cin, 3, 3); Cout == Cin == C."""
    B, C, H, W = x_nchw.shape
    assert w1.shape == (C, C, 3, 3) and w2.shape == (C, C, 3, 3), \
        "only the in_channels == out_channels path is implemented"
    assert C % groups == 0
    L = W * C
    assert L % 128 == 0, "fold/pad channels so W*C is a multiple of 128"

    Bt = _pick_batch_tile(B, H)
    M = Bt * H

    # NCHW -> NHWC -> lane-dense (B, H, W*C); lane l = w*C + c.
    x = jnp.transpose(x_nchw, (0, 2, 3, 1)).reshape(B, H, L)

    # Per-lane affine params (lane l -> channel l % C).
    def lane(p):
        return jnp.tile(p.astype(jnp.float32), W).reshape(1, L)

    # R: per-batch row-summing matrix (replicates each image's H-sum onto its rows).
    rows = jnp.arange(M) // H
    R = (rows[:, None] == rows[None, :]).astype(jnp.float32)              # (M, M)
    # P: group-averaging matrix over lanes, with the 1/n normalization baked in.
    grp = (jnp.arange(L) % C) // (C // groups)
    P = ((grp[:, None] == grp[None, :]).astype(jnp.float32)
         / float(H * (L // groups)))                                      # (L, L)

    # ky-fused lane-mixing conv weights: (3, L, L) -> (3L, L) bf16.
    a1 = _lane_conv_weights(w1, W).reshape(3 * L, L)
    a2 = _lane_conv_weights(w2, W).reshape(3 * L, L)

    kernel = functools.partial(_resblock_kernel, float(eps))

    out = pl.pallas_call(
        kernel,
        out_shape=jax.ShapeDtypeStruct((B, H, L), x.dtype),
        grid_spec=pltpu.PrefetchScalarGridSpec(
            num_scalar_prefetch=0,
            grid=(B // Bt,),
            in_specs=[
                pl.BlockSpec((Bt, H, L), lambda b: (b, 0, 0)),   # x (lane-dense)
                pl.BlockSpec((1, L), lambda b: (0, 0)),          # gamma1 per-lane
                pl.BlockSpec((1, L), lambda b: (0, 0)),          # beta1 per-lane
                pl.BlockSpec((1, L), lambda b: (0, 0)),          # gamma2 per-lane
                pl.BlockSpec((1, L), lambda b: (0, 0)),          # beta2 per-lane
                pl.BlockSpec((M, M), lambda b: (0, 0)),          # R (batch row sums)
                pl.BlockSpec((L, L), lambda b: (0, 0)),          # P (group averaging)
                pl.BlockSpec((3 * L, L), lambda b: (0, 0)),      # conv1 lane weights
                pl.BlockSpec((3 * L, L), lambda b: (0, 0)),      # conv2 lane weights
            ],
            out_specs=pl.BlockSpec((Bt, H, L), lambda b: (b, 0, 0)),
        ),
        compiler_params=pltpu.CompilerParams(
            dimension_semantics=("parallel",),
            vmem_limit_bytes=32 * 1024 * 1024,
        ),
    )(x, lane(gamma1), lane(beta1), lane(gamma2), lane(beta2), R, P, a1, a2)

    return jnp.transpose(out.reshape(B, H, W, C), (0, 3, 1, 2))    # back to NCHW


def resblock_reference(x, gamma1, beta1, gamma2, beta2, w1, w2, groups, eps):
    """Pure-JAX NCHW reference mirroring the PyTorch module."""
    def group_norm(v, gamma, beta):
        B, C, H, W = v.shape
        vg = v.reshape(B, groups, C // groups, H, W)
        mean = vg.mean(axis=(2, 3, 4), keepdims=True)
        var = vg.var(axis=(2, 3, 4), keepdims=True)
        vn = ((vg - mean) / jnp.sqrt(var + eps)).reshape(B, C, H, W)
        return vn * gamma[None, :, None, None] + beta[None, :, None, None]

    def silu(v):
        return v * jax.nn.sigmoid(v)

    def conv(v, w):
        return jax.lax.conv_general_dilated(
            v, w, window_strides=(1, 1), padding="SAME",
            dimension_numbers=("NCHW", "OIHW", "NCHW"),
            precision=jax.lax.Precision.HIGHEST)

    h = conv(silu(group_norm(x, gamma1, beta1)), w1)
    h = conv(silu(group_norm(h, gamma2, beta2)), w2)
    return h + x


if __name__ == "__main__":
    # in_channels == out_channels == 8; W*C = 16*8 = 128 (lane-dense).
    B, C, H, W = 2, 8, 16, 16
    groups, eps = 4, 1e-6

    key = jax.random.PRNGKey(0)
    kx, kg1, kb1, kg2, kb2, kw1, kw2 = jax.random.split(key, 7)

    x = jax.random.normal(kx, (B, C, H, W), jnp.float32)
    gamma1 = 1.0 + 0.1 * jax.random.normal(kg1, (C,), jnp.float32)
    beta1 = 0.1 * jax.random.normal(kb1, (C,), jnp.float32)
    gamma2 = 1.0 + 0.1 * jax.random.normal(kg2, (C,), jnp.float32)
    beta2 = 0.1 * jax.random.normal(kb2, (C,), jnp.float32)
    w1 = 0.1 * jax.random.normal(kw1, (C, C, 3, 3), jnp.float32)
    w2 = 0.1 * jax.random.normal(kw2, (C, C, 3, 3), jnp.float32)

    out = resblock_forward(x, gamma1, beta1, gamma2, beta2, w1, w2,
                           groups=groups, eps=eps)
    out = jax.block_until_ready(out)

    ref = resblock_reference(x, gamma1, beta1, gamma2, beta2, w1, w2, groups, eps)
    assert out.shape == x.shape
    max_err = float(jnp.max(jnp.abs(out - ref)))
    # bf16 conv operands (f32 accumulation) vs. an all-f32 HIGHEST-precision
    # reference -> slightly looser tolerance than a pure-f32 kernel.
    assert jnp.allclose(out, ref, atol=2e-2, rtol=2e-2), max_err

    print("KERNEL_OK")
</pallas_src>

<mosaic_0001>
module attributes {stable_mosaic.version = 11 : i64} {
  func.func @_resblock_kernel(%arg0: i32, %arg1: memref<2x16x128xf32, #tpu.memory_space<vmem>>, %arg2: memref<1x128xf32, #tpu.memory_space<vmem>>, %arg3: memref<1x128xf32, #tpu.memory_space<vmem>>, %arg4: memref<1x128xf32, #tpu.memory_space<vmem>>, %arg5: memref<1x128xf32, #tpu.memory_space<vmem>>, %arg6: memref<32x32xf32, #tpu.memory_space<vmem>>, %arg7: memref<128x128xf32, #tpu.memory_space<vmem>>, %arg8: memref<384x128xbf16, #tpu.memory_space<vmem>>, %arg9: memref<384x128xbf16, #tpu.memory_space<vmem>>, %arg10: memref<2x16x128xf32, #tpu.memory_space<vmem>>) attributes {dimension_semantics = [#tpu.dimension_semantics<parallel>], iteration_bounds = array<i64: 1>, scalar_prefetch = 0 : i64, scratch_operands = 0 : i64, tpu.core_type = #tpu.core_type<tc>, window_params = [{transform_indices = @transform_0, window_bounds = array<i64: 2, 16, 128>}, {pipeline_mode = #tpu.pipeline_mode<synchronous>, transform_indices = @transform_1, window_bounds = array<i64: 1, 128>}, {pipeline_mode = #tpu.pipeline_mode<synchronous>, transform_indices = @transform_2, window_bounds = array<i64: 1, 128>}, {pipeline_mode = #tpu.pipeline_mode<synchronous>, transform_indices = @transform_3, window_bounds = array<i64: 1, 128>}, {pipeline_mode = #tpu.pipeline_mode<synchronous>, transform_indices = @transform_4, window_bounds = array<i64: 1, 128>}, {pipeline_mode = #tpu.pipeline_mode<synchronous>, transform_indices = @transform_5, window_bounds = array<i64: 32, 32>}, {pipeline_mode = #tpu.pipeline_mode<synchronous>, transform_indices = @transform_6, window_bounds = array<i64: 128, 128>}, {pipeline_mode = #tpu.pipeline_mode<synchronous>, transform_indices = @transform_7, window_bounds = array<i64: 384, 128>}, {pipeline_mode = #tpu.pipeline_mode<synchronous>, transform_indices = @transform_8, window_bounds = array<i64: 384, 128>}, {transform_indices = @transform_9, window_bounds = array<i64: 2, 16, 128>}]} {
    %c0 = arith.constant 0 : index
    %c0_0 = arith.constant 0 : index
    %0 = vector.load %arg6[%c0, %c0_0] : memref<32x32xf32, #tpu.memory_space<vmem>>, vector<32x32xf32>
    %c0_1 = arith.constant 0 : index
    %c0_2 = arith.constant 0 : index
    %1 = vector.load %arg7[%c0_1, %c0_2] : memref<128x128xf32, #tpu.memory_space<vmem>>, vector<128x128xf32>
    %c0_3 = arith.constant 0 : index
    %c0_4 = arith.constant 0 : index
    %c0_5 = arith.constant 0 : index
    %2 = vector.load %arg1[%c0_3, %c0_4, %c0_5] : memref<2x16x128xf32, #tpu.memory_space<vmem>>, vector<2x16x128xf32>
    %3 = vector.shape_cast %2 : vector<2x16x128xf32> to vector<32x128xf32>
    %4 = tpu.iota {dimensions = array<i32: 0>} : vector<32x1xi32>
    %c16_i32 = arith.constant 16 : i32
    %c0_i32 = arith.constant 0 : i32
    %5 = arith.cmpi eq, %c16_i32, %c0_i32 : i32
    %c1_i32 = arith.constant 1 : i32
    %6 = arith.select %5, %c1_i32, %c16_i32 : i32
    %7 = vector.broadcast %6 : i32 to vector<32x1xi32>
    %8 = arith.remsi %4, %7 : vector<32x1xi32>
    %c0_i32_6 = arith.constant 0 : i32
    %9 = vector.broadcast %c0_i32_6 : i32 to vector<32x1xi32>
    %10 = arith.cmpi ne, %8, %9 : vector<32x1xi32>
    %c0_i32_7 = arith.constant 0 : i32
    %11 = vector.broadcast %c0_i32_7 : i32 to vector<32x1xi32>
    %12 = arith.cmpi slt, %8, %11 : vector<32x1xi32>
    %c0_i32_8 = arith.constant 0 : i32
    %13 = arith.cmpi slt, %6, %c0_i32_8 : i32
    %14 = vector.broadcast %13 : i1 to vector<32x1xi1>
    %15 = vector.broadcast %14 : vector<32x1xi1> to vector<32x1xi1>
    %16 = arith.xori %12, %15 : vector<32x1xi1>
    %17 = arith.andi %16, %10 : vector<32x1xi1>
    %18 = vector.broadcast %6 : i32 to vector<32x1xi32>
    %19 = arith.addi %8, %18 : vector<32x1xi32>
    %20 = arith.select %17, %19, %8 : vector<32x1xi1>, vector<32x1xi32>
    %c0_i32_9 = arith.constant 0 : i32
    %21 = vector.broadcast %c0_i32_9 : i32 to vector<32x1xi32>
    %22 = arith.cmpi eq, %20, %21 : vector<32x1xi32>
    %c16_i32_10 = arith.constant 16 : i32
    %c0_i32_11 = arith.constant 0 : i32
    %23 = arith.cmpi eq, %c16_i32_10, %c0_i32_11 : i32
    %c1_i32_12 = arith.constant 1 : i32
    %24 = arith.select %23, %c1_i32_12, %c16_i32_10 : i32
    %25 = vector.broadcast %24 : i32 to vector<32x1xi32>
    %26 = arith.remsi %4, %25 : vector<32x1xi32>
    %c0_i32_13 = arith.constant 0 : i32
    %27 = vector.broadcast %c0_i32_13 : i32 to vector<32x1xi32>
    %28 = arith.cmpi ne, %26, %27 : vector<32x1xi32>
    %c0_i32_14 = arith.constant 0 : i32
    %29 = vector.broadcast %c0_i32_14 : i32 to vector<32x1xi32>
    %30 = arith.cmpi slt, %26, %29 : vector<32x1xi32>
    %c0_i32_15 = arith.constant 0 : i32
    %31 = arith.cmpi slt, %24, %c0_i32_15 : i32
    %32 = vector.broadcast %31 : i1 to vector<32x1xi1>
    %33 = vector.broadcast %32 : vector<32x1xi1> to vector<32x1xi1>
    %34 = arith.xori %30, %33 : vector<32x1xi1>
    %35 = arith.andi %34, %28 : vector<32x1xi1>
    %36 = vector.broadcast %24 : i32 to vector<32x1xi32>
    %37 = arith.addi %26, %36 : vector<32x1xi32>
    %38 = arith.select %35, %37, %26 : vector<32x1xi1>, vector<32x1xi32>
    %c15_i32 = arith.constant 15 : i32
    %39 = vector.broadcast %c15_i32 : i32 to vector<32x1xi32>
    %40 = arith.cmpi eq, %38, %39 : vector<32x1xi32>
    %c0_16 = arith.constant 0 : index
    %c0_17 = arith.constant 0 : index
    %41 = vector.load %arg2[%c0_16, %c0_17] : memref<1x128xf32, #tpu.memory_space<vmem>>, vector<1x128xf32>
    %c0_18 = arith.constant 0 : index
    %c0_19 = arith.constant 0 : index
    %42 = vector.load %arg3[%c0_18, %c0_19] : memref<1x128xf32, #tpu.memory_space<vmem>>, vector<1x128xf32>
    %cst = arith.constant dense<0.000000e+00> : vector<32x128xf32>
    %43 = tpu.matmul %0, %3, %cst {dimension_numbers = #tpu.dot_dimension_numbers<[1], [0], [0], [1], [0, 0, 1, 1], [], []>} : vector<32x32xf32>, vector<32x128xf32>, vector<32x128xf32> -> vector<32x128xf32>
    %cst_20 = arith.constant dense<0.000000e+00> : vector<32x128xf32>
    %44 = tpu.matmul %43, %1, %cst_20 {dimension_numbers = #tpu.dot_dimension_numbers<[1], [0], [0], [1], [0, 0, 1, 1], [], []>} : vector<32x128xf32>, vector<128x128xf32>, vector<32x128xf32> -> vector<32x128xf32>
    %45 = arith.subf %3, %44 : vector<32x128xf32>
    %46 = arith.mulf %45, %45 : vector<32x128xf32>
    %cst_21 = arith.constant dense<0.000000e+00> : vector<32x128xf32>
    %47 = tpu.matmul %0, %46, %cst_21 {dimension_numbers = #tpu.dot_dimension_numbers<[1], [0], [0], [1], [0, 0, 1, 1], [], []>} : vector<32x32xf32>, vector<32x128xf32>, vector<32x128xf32> -> vector<32x128xf32>
    %cst_22 = arith.constant dense<0.000000e+00> : vector<32x128xf32>
    %48 = tpu.matmul %47, %1, %cst_22 {dimension_numbers = #tpu.dot_dimension_numbers<[1], [0], [0], [1], [0, 0, 1, 1], [], []>} : vector<32x128xf32>, vector<128x128xf32>, vector<32x128xf32> -> vector<32x128xf32>
    %cst_23 = arith.constant 9.99999997E-7 : f32
    %49 = vector.broadcast %cst_23 : f32 to vector<32x128xf32>
    %50 = arith.addf %48, %49 : vector<32x128xf32>
    %51 = math.rsqrt %50 : vector<32x128xf32>
    %52 = vector.broadcast %41 : vector<1x128xf32> to vector<32x128xf32>
    %53 = arith.mulf %51, %52 : vector<32x128xf32>
    %54 = arith.mulf %44, %53 : vector<32x128xf32>
    %55 = vector.broadcast %42 : vector<1x128xf32> to vector<32x128xf32>
    %56 = arith.subf %55, %54 : vector<32x128xf32>
    %57 = arith.mulf %3, %53 : vector<32x128xf32>
    %58 = arith.addf %57, %56 : vector<32x128xf32>
    %cst_24 = arith.constant 5.000000e-01 : f32
    %59 = vector.broadcast %cst_24 : f32 to vector<32x128xf32>
    %60 = arith.mulf %59, %58 : vector<32x128xf32>
    %61 = math.tanh %60 : vector<32x128xf32>
    %cst_25 = arith.constant 5.000000e-01 : f32
    %62 = vector.broadcast %cst_25 : f32 to vector<32x128xf32>
    %63 = arith.mulf %62, %61 : vector<32x128xf32>
    %cst_26 = arith.constant 5.000000e-01 : f32
    %64 = vector.broadcast %cst_26 : f32 to vector<32x128xf32>
    %65 = arith.addf %63, %64 : vector<32x128xf32>
    %66 = arith.mulf %58, %65 : vector<32x128xf32>
    %cst_27 = arith.constant 0.000000e+00 : f32
    %67 = vector.broadcast %cst_27 : f32 to vector<1x128xf32>
    %68 = vector.extract_strided_slice %66 {offsets = [0, 0], sizes = [31, 128], strides = [1, 1]} : vector<32x128xf32> to vector<31x128xf32>
    %69 = tpu.concatenate %67, %68 in 0 : vector<1x128xf32>, vector<31x128xf32> -> vector<32x128xf32>
    %cst_28 = arith.constant 0.000000e+00 : f32
    %70 = vector.shape_cast %22 : vector<32x1xi1> to vector<32x1xi1>
    %71 = vector.broadcast %70 : vector<32x1xi1> to vector<32x128xi1>
    %72 = vector.broadcast %cst_28 : f32 to vector<32x128xf32>
    %73 = arith.select %71, %72, %69 : vector<32x128xi1>, vector<32x128xf32>
    %74 = vector.extract_strided_slice %66 {offsets = [1, 0], sizes = [31, 128], strides = [1, 1]} : vector<32x128xf32> to vector<31x128xf32>
    %75 = tpu.concatenate %74, %67 in 0 : vector<31x128xf32>, vector<1x128xf32> -> vector<32x128xf32>
    %cst_29 = arith.constant 0.000000e+00 : f32
    %76 = vector.shape_cast %40 : vector<32x1xi1> to vector<32x1xi1>
    %77 = vector.broadcast %76 : vector<32x1xi1> to vector<32x128xi1>
    %78 = vector.broadcast %cst_29 : f32 to vector<32x128xf32>
    %79 = arith.select %77, %78, %75 : vector<32x128xi1>, vector<32x128xf32>
    %80 = tpu.concatenate %73, %66, %79 in 1 : vector<32x128xf32>, vector<32x128xf32>, vector<32x128xf32> -> vector<32x384xf32>
    %81 = arith.truncf %80 : vector<32x384xf32> to vector<32x384xbf16>
    %c0_30 = arith.constant 0 : index
    %c0_31 = arith.constant 0 : index
    %82 = vector.load %arg8[%c0_30, %c0_31] : memref<384x128xbf16, #tpu.memory_space<vmem>>, vector<384x128xbf16>
    %cst_32 = arith.constant dense<0.000000e+00> : vector<32x128xf32>
    %83 = tpu.matmul %81, %82, %cst_32 {dimension_numbers = #tpu.dot_dimension_numbers<[1], [0], [0], [1], [0, 0, 1, 1], [], []>} : vector<32x384xbf16>, vector<384x128xbf16>, vector<32x128xf32> -> vector<32x128xf32>
    %c0_33 = arith.constant 0 : index
    %c0_34 = arith.constant 0 : index
    %84 = vector.load %arg4[%c0_33, %c0_34] : memref<1x128xf32, #tpu.memory_space<vmem>>, vector<1x128xf32>
    %c0_35 = arith.constant 0 : index
    %c0_36 = arith.constant 0 : index
    %85 = vector.load %arg5[%c0_35, %c0_36] : memref<1x128xf32, #tpu.memory_space<vmem>>, vector<1x128xf32>
    %cst_37 = arith.constant dense<0.000000e+00> : vector<32x128xf32>
    %86 = tpu.matmul %0, %83, %cst_37 {dimension_numbers = #tpu.dot_dimension_numbers<[1], [0], [0], [1], [0, 0, 1, 1], [], []>} : vector<32x32xf32>, vector<32x128xf32>, vector<32x128xf32> -> vector<32x128xf32>
    %cst_38 = arith.constant dense<0.000000e+00> : vector<32x128xf32>
    %87 = tpu.matmul %86, %1, %cst_38 {dimension_numbers = #tpu.dot_dimension_numbers<[1], [0], [0], [1], [0, 0, 1, 1], [], []>} : vector<32x128xf32>, vector<128x128xf32>, vector<32x128xf32> -> vector<32x128xf32>
    %88 = arith.subf %83, %87 : vector<32x128xf32>
    %89 = arith.mulf %88, %88 : vector<32x128xf32>
    %cst_39 = arith.constant dense<0.000000e+00> : vector<32x128xf32>
    %90 = tpu.matmul %0, %89, %cst_39 {dimension_numbers = #tpu.dot_dimension_numbers<[1], [0], [0], [1], [0, 0, 1, 1], [], []>} : vector<32x32xf32>, vector<32x128xf32>, vector<32x128xf32> -> vector<32x128xf32>
    %cst_40 = arith.constant dense<0.000000e+00> : vector<32x128xf32>
    %91 = tpu.matmul %90, %1, %cst_40 {dimension_numbers = #tpu.dot_dimension_numbers<[1], [0], [0], [1], [0, 0, 1, 1], [], []>} : vector<32x128xf32>, vector<128x128xf32>, vector<32x128xf32> -> vector<32x128xf32>
    %cst_41 = arith.constant 9.99999997E-7 : f32
    %92 = vector.broadcast %cst_41 : f32 to vector<32x128xf32>
    %93 = arith.addf %91, %92 : vector<32x128xf32>
    %94 = math.rsqrt %93 : vector<32x128xf32>
    %95 = vector.broadcast %84 : vector<1x128xf32> to vector<32x128xf32>
    %96 = arith.mulf %94, %95 : vector<32x128xf32>
    %97 = arith.mulf %87, %96 : vector<32x128xf32>
    %98 = vector.broadcast %85 : vector<1x128xf32> to vector<32x128xf32>
    %99 = arith.subf %98, %97 : vector<32x128xf32>
    %100 = arith.mulf %83, %96 : vector<32x128xf32>
    %101 = arith.addf %100, %99 : vector<32x128xf32>
    %cst_42 = arith.constant 5.000000e-01 : f32
    %102 = vector.broadcast %cst_42 : f32 to vector<32x128xf32>
    %103 = arith.mulf %102, %101 : vector<32x128xf32>
    %104 = math.tanh %103 : vector<32x128xf32>
    %cst_43 = arith.constant 5.000000e-01 : f32
    %105 = vector.broadcast %cst_43 : f32 to vector<32x128xf32>
    %106 = arith.mulf %105, %104 : vector<32x128xf32>
    %cst_44 = arith.constant 5.000000e-01 : f32
    %107 = vector.broadcast %cst_44 : f32 to vector<32x128xf32>
    %108 = arith.addf %106, %107 : vector<32x128xf32>
    %109 = arith.mulf %101, %108 : vector<32x128xf32>
    %cst_45 = arith.constant 0.000000e+00 : f32
    %110 = vector.broadcast %cst_45 : f32 to vector<1x128xf32>
    %111 = vector.extract_strided_slice %109 {offsets = [0, 0], sizes = [31, 128], strides = [1, 1]} : vector<32x128xf32> to vector<31x128xf32>
    %112 = tpu.concatenate %110, %111 in 0 : vector<1x128xf32>, vector<31x128xf32> -> vector<32x128xf32>
    %cst_46 = arith.constant 0.000000e+00 : f32
    %113 = vector.shape_cast %22 : vector<32x1xi1> to vector<32x1xi1>
    %114 = vector.broadcast %113 : vector<32x1xi1> to vector<32x128xi1>
    %115 = vector.broadcast %cst_46 : f32 to vector<32x128xf32>
    %116 = arith.select %114, %115, %112 : vector<32x128xi1>, vector<32x128xf32>
    %117 = vector.extract_strided_slice %109 {offsets = [1, 0], sizes = [31, 128], strides = [1, 1]} : vector<32x128xf32> to vector<31x128xf32>
    %118 = tpu.concatenate %117, %110 in 0 : vector<31x128xf32>, vector<1x128xf32> -> vector<32x128xf32>
    %cst_47 = arith.constant 0.000000e+00 : f32
    %119 = vector.shape_cast %40 : vector<32x1xi1> to vector<32x1xi1>
    %120 = vector.broadcast %119 : vector<32x1xi1> to vector<32x128xi1>
    %121 = vector.broadcast %cst_47 : f32 to vector<32x128xf32>
    %122 = arith.select %120, %121, %118 : vector<32x128xi1>, vector<32x128xf32>
    %123 = tpu.concatenate %116, %109, %122 in 1 : vector<32x128xf32>, vector<32x128xf32>, vector<32x128xf32> -> vector<32x384xf32>
    %124 = arith.truncf %123 : vector<32x384xf32> to vector<32x384xbf16>
    %c0_48 = arith.constant 0 : index
    %c0_49 = arith.constant 0 : index
    %125 = vector.load %arg9[%c0_48, %c0_49] : memref<384x128xbf16, #tpu.memory_space<vmem>>, vector<384x128xbf16>
    %cst_50 = arith.constant dense<0.000000e+00> : vector<32x128xf32>
    %126 = tpu.matmul %124, %125, %cst_50 {dimension_numbers = #tpu.dot_dimension_numbers<[1], [0], [0], [1], [0, 0, 1, 1], [], []>} : vector<32x384xbf16>, vector<384x128xbf16>, vector<32x128xf32> -> vector<32x128xf32>
    %c0_51 = arith.constant 0 : index
    %c0_52 = arith.constant 0 : index
    %c0_53 = arith.constant 0 : index
    %127 = vector.load %arg1[%c0_51, %c0_52, %c0_53] : memref<2x16x128xf32, #tpu.memory_space<vmem>>, vector<2x16x128xf32>
    %128 = vector.shape_cast %127 : vector<2x16x128xf32> to vector<32x128xf32>
    %129 = arith.addf %126, %128 : vector<32x128xf32>
    %130 = vector.shape_cast %129 : vector<32x128xf32> to vector<2x16x128xf32>
    %c0_54 = arith.constant 0 : index
    %c0_55 = arith.constant 0 : index
    %c0_56 = arith.constant 0 : index
    %131 = vector.load %arg10[%c0_54, %c0_55, %c0_56] : memref<2x16x128xf32, #tpu.memory_space<vmem>>, vector<2x16x128xf32>
    tpu.vector_store %arg10[%c0_54, %c0_55, %c0_56], %130 {strides = array<i32>} : memref<2x16x128xf32, #tpu.memory_space<vmem>>, vector<2x16x128xf32>,
    return
  }
  func.func @transform_0(%arg0: i32) -> (i32, i32, i32) {
    %c0_i32 = arith.constant 0 : i32
    %c0_i32_0 = arith.constant 0 : i32
    %c0_i32_1 = arith.constant 0 : i32
    return %arg0, %c0_i32, %c0_i32_0 : i32, i32, i32
  }
  func.func @transform_1(%arg0: i32) -> (i32, i32) {
    %c0_i32 = arith.constant 0 : i32
    %c0_i32_0 = arith.constant 0 : i32
    %c0_i32_1 = arith.constant 0 : i32
    return %c0_i32, %c0_i32_0 : i32, i32
  }
  func.func @transform_2(%arg0: i32) -> (i32, i32) {
    %c0_i32 = arith.constant 0 : i32
    %c0_i32_0 = arith.constant 0 : i32
    %c0_i32_1 = arith.constant 0 : i32
    return %c0_i32, %c0_i32_0 : i32, i32
  }
  func.func @transform_3(%arg0: i32) -> (i32, i32) {
    %c0_i32 = arith.constant 0 : i32
    %c0_i32_0 = arith.constant 0 : i32
    %c0_i32_1 = arith.constant 0 : i32
    return %c0_i32, %c0_i32_0 : i32, i32
  }
  func.func @transform_4(%arg0: i32) -> (i32, i32) {
    %c0_i32 = arith.constant 0 : i32
    %c0_i32_0 = arith.constant 0 : i32
    %c0_i32_1 = arith.constant 0 : i32
    return %c0_i32, %c0_i32_0 : i32, i32
  }
  func.func @transform_5(%arg0: i32) -> (i32, i32) {
    %c0_i32 = arith.constant 0 : i32
    %c0_i32_0 = arith.constant 0 : i32
    %c0_i32_1 = arith.constant 0 : i32
    return %c0_i32, %c0_i32_0 : i32, i32
  }
  func.func @transform_6(%arg0: i32) -> (i32, i32) {
    %c0_i32 = arith.constant 0 : i32
    %c0_i32_0 = arith.constant 0 : i32
    %c0_i32_1 = arith.constant 0 : i32
    return %c0_i32, %c0_i32_0 : i32, i32
  }
  func.func @transform_7(%arg0: i32) -> (i32, i32) {
    %c0_i32 = arith.constant 0 : i32
    %c0_i32_0 = arith.constant 0 : i32
    %c0_i32_1 = arith.constant 0 : i32
    return %c0_i32, %c0_i32_0 : i32, i32
  }
  func.func @transform_8(%arg0: i32) -> (i32, i32) {
    %c0_i32 = arith.constant 0 : i32
    %c0_i32_0 = arith.constant 0 : i32
    %c0_i32_1 = arith.constant 0 : i32
    return %c0_i32, %c0_i32_0 : i32, i32
  }
  func.func @transform_9(%arg0: i32) -> (i32, i32, i32) {
    %c0_i32 = arith.constant 0 : i32
    %c0_i32_0 = arith.constant 0 : i32
    %c0_i32_1 = arith.constant 0 : i32
    return %arg0, %c0_i32, %c0_i32_0 : i32, i32, i32
  }
}

</mosaic_0001>

<bundles_post_ra>
// kernel: tpu_custom_call.1
= control target key start
LH: loop header
LB: loop body
LE: loop exit
PB: predicated region body
PF: predicated region fallthrough
CT: control target
= control target key end

     0   :  { %14 = vsyncpa [#allocation3], 0  ;;  %s3085_s0 = inlined_call_operand.hbm [shape: f32[2,16,128], index: 0, kind: input, shape index: {}]   ;;  %s3086_s1 = inlined_call_operand.vmem [shape: f32[1,128], index: 1, kind: input, shape index: {}]   ;;  %s3087_s2 = inlined_call_operand.vmem [shape: f32[1,128], index: 2, kind: input, shape index: {}]   ;;  %s3088_s3 = inlined_call_operand.vmem [shape: f32[1,128], index: 3, kind: input, shape index: {}]   ;;  %s3089_s4 = inlined_call_operand.vmem [shape: f32[1,128], index: 4, kind: input, shape index: {}]   ;;  %s3090_s5 = inlined_call_operand.hbm [shape: f32[32,32], index: 5, kind: input, shape index: {}]   ;;  %s3091_s6 = inlined_call_operand.hbm [shape: f32[128,128], index: 6, kind: input, shape index: {}]   ;;  %s3092_s7 = inlined_call_operand.hbm [shape: bf16[384,128], index: 7, kind: input, shape index: {}]   ;;  %s3093_s8 = inlined_call_operand.hbm [shape: bf16[384,128], index: 8, kind: input, shape index: {}]   ;;  %s3094_s9 = inlined_call_operand.hbm [shape: f32[2,16,128], index: 9, kind: output, shape index: {}]  }
   0x1   :  { %15 = vsyncpa [#allocation6], 0 }
   0x2   :  { %16 = vsyncpa [#allocation9], 0 }
   0x3   :  { %17 = vsyncpa [#allocation4], 0  ;;  %s2652_s30 = smov [#allocation5]   ;;  %s2653_s11 = smov [#allocation8]  }
   0x4   :  { %s43_s10 = sshll.u32 %s2652_s30, 4  ;;  %s67_s12 = sshll.u32 %s2653_s11, 4  ;;  %s44_s10 = int_to_ptr.vmem [resolvable:$true] %s43_s10  ;;  %s2713_s12 = int_to_ptr.vmem [resolvable:$true] %s67_s12 }
   0x5   :  { %s2512_s15 = scalar_lea.hbm %s3090_s5, 512 }
   0x6   :  { %p2513_p0 = scmp.ne.s32.totalorder %s3090_s5, %s2512_s15  ;;  %p2516_p1 = scmp.lt.u32.totalorder %s2512_s15, %s3090_s5 }
   0x8   :  { %p2518_p2 = pnand %p2516_p1, %p2513_p0 }
   0xa   :  { %2521 = shalt.err (!%p2518_p2)
}
   0xb   :  { %s2522_s20 = scalar_lea.vmem %s44_s10, 512  ;;  %p2527_p4 = scmp.lt.s32.totalorder %s44_s10, %s44_s10 }
   0xc   :  { %p2523_p3 = scmp.ne.s32.totalorder %s44_s10, %s2522_s20  ;;  %p2528_p5 = scmp.lt.s32.totalorder %s2522_s20, %s2522_s20 }
   0xe   :  { %p2529_p6 = por %p2528_p5, %p2527_p4 }
  0x10   :  { %p2530_p7 = pnand %p2529_p6, %p2523_p3 }
  0x12   :  { %2533 = shalt.err (!%p2530_p7)
}
  0x13   :  { %s2654_s21 = smov 128   ;;  %s2655_s22 = smov 8  }
  0x14   :  { %49 = dma.hbm_to_vmem [thread:$0]  %s3090_s5, 512, %s44_s10, [#allocation6], %s2654_s21, %s2654_s21, %s2655_s22  }
  0x15   :  { %s2534_s27 = scalar_lea.hbm %s3092_s7, 3072 }
  0x16   :  { %p2535_p8 = scmp.ne.s32.totalorder %s3092_s7, %s2534_s27  ;;  %p2538_p9 = scmp.lt.u32.totalorder %s2534_s27, %s3092_s7 }
  0x18   :  { %p2540_p10 = pnand %p2538_p9, %p2535_p8 }
  0x1a   :  { %2543 = shalt.err (!%p2540_p10)
}
  0x1b   :  { %s2544_s13 = scalar_lea.vmem %s2713_s12, 3072  ;;  %p2549_p12 = scmp.lt.s32.totalorder %s2713_s12, %s2713_s12 }
  0x1c   :  { %p2545_p11 = scmp.ne.s32.totalorder %s2713_s12, %s2544_s13  ;;  %p2550_p13 = scmp.lt.s32.totalorder %s2544_s13, %s2544_s13 }
  0x1e   :  { %p2551_p0 = por %p2550_p13, %p2549_p12 }
  0x20   :  { %p2552_p1 = pnand %p2551_p0, %p2545_p11 }
  0x22   :  { %2555 = shalt.err (!%p2552_p1)
}
  0x23   :  { %s2656_s5 = smov 64   ;;  %s2657_s10 = smov 4  }
  0x24   :  { %73 = dma.hbm_to_vmem [thread:$0]  %s3092_s7, 3072, %s2713_s12, [#allocation9], %s2656_s5, %s2656_s5, %s2657_s10  }
  0x25   :  { %s2658_s16 = smov [#allocation2]   ;;  %s2659_s18 = smov [#allocation7]  }
  0x26   :  { %s23_s17 = sshll.u32 %s2658_s16, 4  ;;  %s55_s19 = sshll.u32 %s2659_s18, 4  ;;  %s24_s17 = int_to_ptr.vmem [resolvable:$true] %s23_s17  ;;  %s2750_s19 = int_to_ptr.vmem [resolvable:$true] %s55_s19 }
  0x27   :  { %s2556_s24 = scalar_lea.hbm %s3085_s0, 512 }
  0x28   :  { %p2557_p2 = scmp.ne.s32.totalorder %s3085_s0, %s2556_s24  ;;  %p2560_p3 = scmp.lt.u32.totalorder %s2556_s24, %s3085_s0 }
  0x2a   :  { %p2562_p4 = pnand %p2560_p3, %p2557_p2 }
  0x2c   :  { %2565 = shalt.err (!%p2562_p4)
}
  0x2d   :  { %s2566_s7 = scalar_lea.vmem %s24_s17, 512  ;;  %p2571_p6 = scmp.lt.s32.totalorder %s24_s17, %s24_s17 }
  0x2e   :  { %p2567_p5 = scmp.ne.s32.totalorder %s24_s17, %s2566_s7  ;;  %p2572_p7 = scmp.lt.s32.totalorder %s2566_s7, %s2566_s7 }
  0x30   :  { %p2573_p8 = por %p2572_p7, %p2571_p6 }
  0x32   :  { %p2574_p9 = pnand %p2573_p8, %p2567_p5 }
  0x34   :  { %2577 = shalt.err (!%p2574_p9)
}
  0x35   :  { %29 = dma.hbm_to_vmem [thread:$0]  %s3085_s0, 512, %s24_s17, [#allocation3], %s2654_s21, %s2654_s21, %s2655_s22  }
  0x36   :  { %s2578_s13 = scalar_lea.hbm %s3091_s6, 2048 }
  0x37   :  { %p2579_p10 = scmp.ne.s32.totalorder %s3091_s6, %s2578_s13  ;;  %p2582_p11 = scmp.lt.u32.totalorder %s2578_s13, %s3091_s6 }
  0x39   :  { %p2584_p12 = pnand %p2582_p11, %p2579_p10 }
  0x3b   :  { %2587 = shalt.err (!%p2584_p12)
}
  0x3c   :  { %s2588_s20 = scalar_lea.vmem %s2750_s19, 2048  ;;  %p2593_p0 = scmp.lt.s32.totalorder %s2750_s19, %s2750_s19 }
  0x3d   :  { %p2589_p13 = scmp.ne.s32.totalorder %s2750_s19, %s2588_s20  ;;  %p2594_p1 = scmp.lt.s32.totalorder %s2588_s20, %s2588_s20 }
  0x3f   :  { %p2595_p2 = por %p2594_p1, %p2593_p0 }
  0x41   :  { %p2596_p3 = pnand %p2595_p2, %p2589_p13 }
  0x43   :  { %2599 = shalt.err (!%p2596_p3)
}
  0x44   :  { %61 = dma.hbm_to_vmem [thread:$0]  %s3091_s6, 2048, %s2750_s19, [#allocation6], %s2654_s21, %s2654_s21, %s2655_s22  }
  0x45   :  { %s2660_s23 = smov [#allocation10]   ;;  %s2600_s27 = scalar_lea.hbm %s3093_s8, 3072 }
  0x46   :  { %s79_s24 = sshll.u32 %s2660_s23, 4  ;;  %p2601_p4 = scmp.ne.s32.totalorder %s3093_s8, %s2600_s27  ;;  %s80_s24 = int_to_ptr.vmem [resolvable:$true] %s79_s24 }
  0x47   :  { %p2604_p5 = scmp.lt.u32.totalorder %s2600_s27, %s3093_s8 }
  0x49   :  { %p2606_p6 = pnand %p2604_p5, %p2601_p4 }
  0x4b   :  { %2609 = shalt.err (!%p2606_p6)
}
  0x4c   :  { %s2610_s30 = scalar_lea.vmem %s80_s24, 3072  ;;  %p2615_p8 = scmp.lt.s32.totalorder %s80_s24, %s80_s24 }
  0x4d   :  { %p2611_p7 = scmp.ne.s32.totalorder %s80_s24, %s2610_s30  ;;  %p2616_p9 = scmp.lt.s32.totalorder %s2610_s30, %s2610_s30 }
  0x4f   :  { %p2617_p10 = por %p2616_p9, %p2615_p8 }
  0x51   :  { %p2618_p11 = pnand %p2617_p10, %p2611_p7 }
  0x53   :  { %2621 = shalt.err (!%p2618_p11)
}
  0x54   :  { %85 = dma.hbm_to_vmem [thread:$0]  %s3093_s8, 3072, %s80_s24, [#allocation9], %s2656_s5, %s2656_s5, %s2657_s10  }
  0x55   :  { %2644 = dma.done.wait [#allocation3], 512  }
  0x56   :  { %2645 = vsyncadd [#allocation3], 4294966784 }
  0x57   :  { %2646 = dma.done.wait [#allocation6], 2560  }
  0x58   :  { %2647 = vsyncadd [#allocation6], 4294964736 }
  0x59   :  { %2648 = dma.done.wait [#allocation9], 6144  }
  0x5a   :  { %2649 = vsyncadd [#allocation9], 4294961152  ;;  %vm189_vm0 = vcmask 261120   ;;  %v2802_v0 = vld [vmem:[#allocation2] sm:$0xff]  ;;  %v2804_v1 = vld [vmem:[#allocation2 + $0x8] sm:$0xff]  ;;  %vm610_vm1 = vcmask 1040384  }
  0x5b   :  { %v2806_v2 = vld [vmem:[#allocation2 + $0x10] sm:$0xff]  ;;  %v2257_v3 = vpack.c.bf16 %v2804_v1, %v2802_v0  ;;  %v2810_v4 = vld [vmem:[#allocation2 + $0x18] sm:$0xff]  ;;  %v2812_v5 = vld [vmem:[#allocation5] sm:$0xff]  ;;  %vm635_vm2 = vcmask 1046528   ;;  %vm2661_vm5 = vmmov 1  }
  0x5c   :  { %v2261_v6 = vpack.c.bf16 %v2810_v4, %v2806_v2  ;;  %2017 = vmatprep.mubr.msk.f32.mxu0 %vm189_vm0, %v2812_v5  ;;  %v106_v7 = vld [vmem:[#allocation7] sm:$0xff]  ;;  %v107_v8 = vld [vmem:[#allocation7 + $0x8] sm:$0xff]  ;;  %v108_v9 = vld [vmem:[#allocation7 + $0x10] sm:$0xff] }
  0x5d   :  { %2258 = vmatprep.subr.bf16.mxu0 %v2257_v3  ;;  %v109_v10 = vld [vmem:[#allocation7 + $0x18] sm:$0xff]  ;;  %v2818_v11 = vpack.c.bf16 %v107_v8, %v106_v7  ;;  %v110_v13 = vld [vmem:[#allocation7 + $0x20] sm:$0xff]  ;;  %v111_v14 = vld [vmem:[#allocation7 + $0x28] sm:$0xff] }
  0x5e   :  { %2260 = vmatpush3.bf16.msra.mxu0 %v2257_v3  ;;  %v2820_v12 = vpack.c.bf16 %v109_v10, %v108_v9  ;;  %v2822_v15 = vld [vmem:[#allocation5 + $0x8] sm:$0xff]  ;;  %v2825_v16 = vld [vmem:[#allocation5 + $0x10] sm:$0xff]  ;;  %v113_v18 = vld [vmem:[#allocation7 + $0x38] sm:$0xff]  ;;  %v2829_v19 = vpack.c.bf16 %v111_v14, %v110_v13 }
  0x5f   :  { %2262 = vmatprep.subr.bf16.mxu0 %v2261_v6  ;;  %2266 = vmatprep.subr.bf16.mxu1 %v2818_v11  ;;  %v112_v17 = vld [vmem:[#allocation7 + $0x30] sm:$0xff]  ;;  %v2831_v20 = vld [vmem:[#allocation5 + $0x18] sm:$0xff]  ;;  %v114_v21 = vld [vmem:[#allocation7 + $0x40] sm:$0xff] }
  0x60   :  { %2268 = vmatpush3.bf16.msra.mxu1 %v2818_v11  ;;  %v115_v22 = vld [vmem:[#allocation7 + $0x48] sm:$0xff]  ;;  %v2839_v23 = vpack.c.bf16 %v113_v18, %v112_v17  ;;  %v116_v24 = vld [vmem:[#allocation7 + $0x50] sm:$0xff]  ;;  %v117_v25 = vld [vmem:[#allocation7 + $0x58] sm:$0xff] }
  0x61   :  { %2270 = vmatprep.subr.bf16.mxu1 %v2820_v12  ;;  %v2845_v26 = vpack.c.bf16 %v115_v22, %v114_v21  ;;  %v118_v27 = vld [vmem:[#allocation7 + $0x60] sm:$0xff]  ;;  %v119_v28 = vld [vmem:[#allocation7 + $0x68] sm:$0xff]  ;;  %v2851_v29 = vpack.c.bf16 %v117_v25, %v116_v24  ;;  %v120_v30 = vld [vmem:[#allocation7 + $0x70] sm:$0xff] }
  0x62   :  { %2264 = vmatpush3.bf16.msra.mxu0 %v2261_v6  ;;  %v121_v31 = vld [vmem:[#allocation7 + $0x78] sm:$0xff]  ;;  %v2855_v32 = vpack.c.bf16 %v119_v28, %v118_v27  ;;  %v2428_v56 = vld [vmem:[#allocation8 + $0x40] sm:$0xff]   ;;  %v2430_v58 = vld [vmem:[#allocation8 + $0x48] sm:$0xff]  }
  0x63   :  { %v2859_v33 = vpack.c.bf16 %v121_v31, %v120_v30  ;;  %v2429_v57 = vld [vmem:[#allocation8] sm:$0xff]   ;;  %v2431_v59 = vld [vmem:[#allocation8 + $0x8] sm:$0xff]   ;;  %v2433_v61 = vld [vmem:[#allocation8 + $0x50] sm:$0xff]  }
  0x64   :  { %2272 = vmatpush3.bf16.msra.mxu1 %v2820_v12  ;;  %v2432_v60 = vld [vmem:[#allocation8 + $0x80] sm:$0xff]   ;;  %v2434_v62 = vld [vmem:[#allocation8 + $0x10] sm:$0xff]   ;;  %v2435_v63 = vld [vmem:[#allocation8 + $0x88] sm:$0xff]  }
  0x65   :  { %2018 = vmatmul.mubr.msk.f32.vlgmr.msra.gmra.mrb[0].mxu0 %vm189_vm0, %v2822_v15  ;;  %2274 = vmatprep.subr.bf16.mxu1 %v2829_v19  ;;  %v2436_v3 = vld [vmem:[#allocation8 + $0x58] sm:$0xff]   ;;  %v2438_v6 = vld [vmem:[#allocation8 + $0x90] sm:$0xff]   ;;  %v2439_v8 = vld [vmem:[#allocation8 + $0x60] sm:$0xff]  }
  0x66   :  { %2020 = vmatprep.mubr.msk.f32.mxu0 %vm189_vm0, %v2825_v16  ;;  %v2437_v7 = vld [vmem:[#allocation8 + $0x18] sm:$0xff]   ;;  %v2440_v10 = vld [vmem:[#allocation8 + $0x20] sm:$0xff]   ;;  %v2442_v13 = vld [vmem:[#allocation8 + $0x68] sm:$0xff]  }
  0x67   :  { %v2441_v9 = vld [vmem:[#allocation8 + $0x98] sm:$0xff]   ;;  %v2444_v14 = vld [vmem:[#allocation8 + $0xa0] sm:$0xff]   ;;  %v2443_v17 = vld [vmem:[#allocation8 + $0x28] sm:$0xff]  }
  0x68   :  { %2276 = vmatpush3.bf16.msra.mxu1 %v2829_v19  ;;  %v2445_v18 = vld [vmem:[#allocation8 + $0x70] sm:$0xff]   ;;  %v2447_v21 = vld [vmem:[#allocation8 + $0xa8] sm:$0xff]   ;;  %v2448_v24 = vld [vmem:[#allocation8 + $0x78] sm:$0xff]  }
  0x69   :  { %2021 = vmatmul.mubr.msk.f32.gmra.mrb[2].mxu0 %vm189_vm0, %v2831_v20  ;;  %2278 = vmatprep.subr.bf16.mxu1 %v2839_v23  ;;  %v2446_v22 = vld [vmem:[#allocation8 + $0x30] sm:$0xff]   ;;  %v2449_v25 = vld [vmem:[#allocation8 + $0x38] sm:$0xff]  }
  0x6a   :  { %2069 = vmatprep.mubr.msk.f32.mxu0 %vm189_vm0, %v2812_v5  ;;  %v2450_v27 = vld [vmem:[#allocation8 + $0xb0] sm:$0xff]   ;;  %v2451_v28 = vld [vmem:[#allocation8 + $0xb8] sm:$0xff]  }
  0x6c   :  { %2280 = vmatpush3.bf16.msra.mxu1 %v2839_v23 }
  0x6d   :  { %2282 = vmatprep.subr.bf16.mxu1 %v2845_v26 }
  0x70   :  { %2284 = vmatpush3.bf16.msra.mxu1 %v2845_v26 }
  0x71   :  { %2286 = vmatprep.subr.bf16.mxu1 %v2851_v29 }
  0x74   :  { %2288 = vmatpush3.bf16.msra.mxu1 %v2851_v29 }
  0x75   :  { %2290 = vmatprep.subr.bf16.mxu1 %v2855_v32 }
  0x78   :  { %2292 = vmatpush3.bf16.msra.mxu1 %v2855_v32 }
  0x79   :  { %2294 = vmatprep.subr.bf16.mxu1 %v2859_v33 }
  0x7c   :  { %2296 = vmatpush3.bf16.msra.mxu1 %v2859_v33 }
  0x7d   :  { %1877 = vmatprep.subr.bf16.mxu1 %v2428_v56 }
 0x138   :  { %v2019_v34 = vpop.f32.mrb[0].mxu0 }
 0x139   :  { %v268_v35 = vpop.f32.mrb[1].mxu0 }
 0x13a   :  { %2055 = vmatprep.mubr.f32.mxu1 %v268_v35 }
 0x13b   :  { %2056 = vmatmul.mubr.f32.vlgmr.msra.gmra.mrb[0].mxu1 %v2019_v34 }
 0x13c   :  { %v2022_v36 = vpop.f32.mrb[2].mxu0  ;;  %1878 = vmatpush3.bf16.msra.mxu1 %v2429_v57 }
 0x13d   :  { %v278_v37 = vpop.f32.mrb[3].mxu0  ;;  %1879 = vmatprep.subr.bf16.mxu1 %v2430_v58 }
 0x13e   :  { %2058 = vmatprep.mubr.f32.mxu1 %v278_v37 }
 0x13f   :  { %2059 = vmatmul.mubr.f32.gmra.mrb[2].mxu1 %v2022_v36 }
 0x140   :  { %1880 = vmatpush3.bf16.msra.mxu1 %v2431_v59 }
 0x141   :  { %1881 = vmatprep.subr.bf16.mxu1 %v2433_v61 }
 0x144   :  { %1882 = vmatpush3.bf16.msra.mxu1 %v2434_v62 }
 0x145   :  { %1883 = vmatprep.subr.bf16.mxu1 %v2436_v3 }
 0x148   :  { %1884 = vmatpush3.bf16.msra.mxu1 %v2437_v7 }
 0x149   :  { %1885 = vmatprep.subr.bf16.mxu1 %v2439_v8 }
 0x14c   :  { %1886 = vmatpush3.bf16.msra.mxu1 %v2440_v10 }
 0x14d   :  { %1887 = vmatprep.subr.bf16.mxu1 %v2442_v13 }
 0x150   :  { %1888 = vmatpush3.bf16.msra.mxu1 %v2443_v17 }
 0x151   :  { %1889 = vmatprep.subr.bf16.mxu1 %v2445_v18 }
 0x154   :  { %1890 = vmatpush3.bf16.msra.mxu1 %v2446_v22 }
 0x155   :  { %1891 = vmatprep.subr.bf16.mxu1 %v2448_v24 }
 0x158   :  { %1892 = vmatpush3.bf16.msra.mxu1 %v2449_v25 }
 0x20e   :  { %v2864_v38 = vpop.f32.mrb[0].mxu1 }
 0x20f   :  { %v373_v39 = vsub.f32 %v2804_v1, %v2864_v38  ;;  %v2868_v40 = vpop.f32.mrb[1].mxu1 }
 0x210   :  { %v372_v41 = vsub.f32 %v2802_v0, %v2868_v40 }
 0x211   :  { %v377_v42 = vmul.f32 %v373_v39, %v373_v39 }
 0x212   :  { %v376_v43 = vmul.f32 %v372_v41, %v372_v41  ;;  %v2872_v44 = vpop.f32.mrb[2].mxu1 }
 0x213   :  { %v375_v45 = vsub.f32 %v2810_v4, %v2872_v44  ;;  %v2876_v46 = vpop.f32.mrb[3].mxu1 }
 0x214   :  { %v374_v47 = vsub.f32 %v2806_v2, %v2876_v46  ;;  %v2297_v48 = vpack.c.bf16 %v377_v42, %v376_v43  ;;  %v1725_v42 = vld [vmem:[%s3086_s1] ss:$0 sm:$0xff] }
 0x215   :  { %v379_v49 = vmul.f32 %v375_v45, %v375_v45 }
 0x216   :  { %v378_v50 = vmul.f32 %v374_v47, %v374_v47  ;;  %2298 = vmatprep.subr.bf16.mxu0 %v2297_v48 }
 0x217   :  { %2300 = vmatpush3.bf16.msra.mxu0 %v2297_v48 }
 0x218   :  { %v2301_v51 = vpack.c.bf16 %v379_v49, %v378_v50  ;;  %v1726_v49 = vld [vmem:[%s3087_s2] ss:$0 sm:$0xff] }
 0x21a   :  { %2302 = vmatprep.subr.bf16.mxu0 %v2301_v51 }
 0x21b   :  { %2304 = vmatpush3.bf16.msra.mxu0 %v2301_v51 }
 0x21c   :  { %2306 = vmatprep.subr.bf16.mxu0 %v2818_v11 }
 0x21e   :  { %2070 = vmatmul.mubr.msk.f32.vlgmr.msra.gmra.mrb[4].mxu0 %vm189_vm0, %v2822_v15 }
 0x21f   :  { %2072 = vmatprep.mubr.msk.f32.mxu0 %vm189_vm0, %v2825_v16  ;;  %2308 = vmatpush3.bf16.msra.mxu0 %v2818_v11 }
 0x220   :  { %2310 = vmatprep.subr.bf16.mxu0 %v2820_v12 }
 0x222   :  { %2073 = vmatmul.mubr.msk.f32.gmra.mrb[6].mxu0 %vm189_vm0, %v2831_v20 }
 0x223   :  { %2312 = vmatpush3.bf16.msra.mxu0 %v2820_v12 }
 0x224   :  { %2314 = vmatprep.subr.bf16.mxu0 %v2829_v19 }
 0x227   :  { %2316 = vmatpush3.bf16.msra.mxu0 %v2829_v19 }
 0x228   :  { %2318 = vmatprep.subr.bf16.mxu0 %v2839_v23 }
 0x22b   :  { %2320 = vmatpush3.bf16.msra.mxu0 %v2839_v23 }
 0x22c   :  { %2322 = vmatprep.subr.bf16.mxu0 %v2845_v26 }
 0x22f   :  { %2324 = vmatpush3.bf16.msra.mxu0 %v2845_v26 }
 0x230   :  { %2326 = vmatprep.subr.bf16.mxu0 %v2851_v29 }
 0x233   :  { %2328 = vmatpush3.bf16.msra.mxu0 %v2851_v29 }
 0x234   :  { %2330 = vmatprep.subr.bf16.mxu0 %v2855_v32 }
 0x237   :  { %2332 = vmatpush3.bf16.msra.mxu0 %v2855_v32 }
 0x238   :  { %2334 = vmatprep.subr.bf16.mxu0 %v2859_v33 }
 0x23b   :  { %2336 = vmatpush3.bf16.msra.mxu0 %v2859_v33 }
 0x23c   :  { %2113 = vmatprep.subr.bf16.mxu0 %v2432_v60 }
 0x2f1   :  { %v2071_v52 = vpop.f32.mrb[4].mxu0 }
 0x2f2   :  { %v446_v53 = vpop.f32.mrb[5].mxu0 }
 0x2f3   :  { %2107 = vmatprep.mubr.f32.mxu0 %v446_v53 }
 0x2f4   :  { %2108 = vmatmul.mubr.f32.vlgmr.msra.gmra.mrb[8].mxu0 %v2071_v52 }
 0x2f5   :  { %v2074_v54 = vpop.f32.mrb[6].mxu0  ;;  %2114 = vmatpush3.bf16.msra.mxu0 %v2432_v60 }
 0x2f6   :  { %v456_v55 = vpop.f32.mrb[7].mxu0  ;;  %2115 = vmatprep.subr.bf16.mxu0 %v2435_v63 }
 0x2f7   :  { %2110 = vmatprep.mubr.f32.mxu0 %v456_v55 }
 0x2f8   :  { %2111 = vmatmul.mubr.f32.gmra.mrb[10].mxu0 %v2074_v54 }
 0x2f9   :  { %2116 = vmatpush3.bf16.msra.mxu0 %v2435_v63 }
 0x2fa   :  { %2117 = vmatprep.subr.bf16.mxu0 %v2438_v6 }
 0x2fd   :  { %2118 = vmatpush3.bf16.msra.mxu0 %v2438_v6 }
 0x2fe   :  { %2119 = vmatprep.subr.bf16.mxu0 %v2441_v9 }
 0x301   :  { %2120 = vmatpush3.bf16.msra.mxu0 %v2441_v9 }
 0x302   :  { %2121 = vmatprep.subr.bf16.mxu0 %v2444_v14 }
 0x305   :  { %2122 = vmatpush3.bf16.msra.mxu0 %v2444_v14 }
 0x306   :  { %2123 = vmatprep.subr.bf16.mxu0 %v2447_v21 }
 0x309   :  { %2124 = vmatpush3.bf16.msra.mxu0 %v2447_v21 }
 0x30a   :  { %2125 = vmatprep.subr.bf16.mxu0 %v2450_v27 }
 0x30d   :  { %2126 = vmatpush3.bf16.msra.mxu0 %v2450_v27 }
 0x30e   :  { %2127 = vmatprep.subr.bf16.mxu0 %v2451_v28 }
 0x311   :  { %2128 = vmatpush3.bf16.msra.mxu0 %v2451_v28 }
 0x312   :  { %2346 = vmatprep.subr.bf16.mxu0 %v2818_v11 }
 0x3c7   :  { %v2109_v30 = vpop.f32.mrb[8].mxu0 }
 0x3c8   :  { %v537_v31 = vadd.f32 1e-06, %v2109_v30  ;;  %v531_v34 = vpop.f32.mrb[9].mxu0 }
 0x3c9   :  { %v532_v35 = vadd.f32 1e-06, %v531_v34 }
 0x3ca   :  { %2476 = vrsqrt.f32 %v537_v31 }
 0x3cb   :  { %2478 = vrsqrt.f32 %v532_v35  ;;  %v2112_v36 = vpop.f32.mrb[10].mxu0 }
 0x3cc   :  { %v547_v37 = vadd.f32 1e-06, %v2112_v36  ;;  %v541_v39 = vpop.f32.mrb[11].mxu0 }
 0x3cd   :  { %v542_v41 = vadd.f32 1e-06, %v541_v39 }
 0x3ce   :  { %2480 = vrsqrt.f32 %v547_v37 }
 0x3cf   :  { %2482 = vrsqrt.f32 %v542_v41 }
 0x3d4   :  { %v2477_v43 = vpop.eup %2476 }
 0x3d5   :  { %v2479_v45 = vpop.eup %2478  ;;  %v561_v47 = vmul.f32 %v2477_v43, %v1725_v42 }
 0x3d6   :  { %v560_v48 = vmul.f32 %v2479_v45, %v1725_v42 }
 0x3d7   :  { %v565_v50 = vmul.f32 %v2864_v38, %v561_v47  ;;  %v579_v56 = vmul.f32 %v561_v47, %v2804_v1 }
 0x3d8   :  { %v2481_v51 = vpop.eup %2480  ;;  %v564_v52 = vmul.f32 %v560_v48, %v2868_v40  ;;  %v578_v59 = vmul.f32 %v560_v48, %v2802_v0  ;;  %v126_v0 = vlaneseq }
 0x3d9   :  { %v2483_v53 = vpop.eup %2482  ;;  %v563_v54 = vmul.f32 %v2481_v51, %v1725_v42  ;;  %v575_v55 = vsub.f32 %v1726_v49, %v565_v50 }
 0x3da   :  { %v562_v57 = vmul.f32 %v2483_v53, %v1725_v42  ;;  %v574_v58 = vsub.f32 %v1726_v49, %v564_v52 }
 0x3db   :  { %v567_v60 = vmul.f32 %v2872_v44, %v563_v54  ;;  %v583_v61 = vadd.f32 %v579_v56, %v575_v55  ;;  %v581_v6 = vmul.f32 %v563_v54, %v2810_v4  ;;  %v127_v44 = vshrl.u32 %v126_v0, 7 }
 0x3dc   :  { %v566_v62 = vmul.f32 %v562_v57, %v2876_v46  ;;  %v582_v63 = vadd.f32 %v578_v59, %v574_v58  ;;  %v580_v8 = vmul.f32 %v562_v57, %v2806_v2 }
 0x3dd   :  { %v587_v3 = vmul.f32 0.5, %v583_v61  ;;  %v577_v38 = vsub.f32 %v1726_v49, %v567_v60  ;;  %v135_v18 = vand.u32 15, %v127_v44  ;;  %v128_v21 = vadd.s32 8, %v127_v44 }
 0x3de   :  { %v586_v40 = vmul.f32 0.5, %v582_v63  ;;  %v576_v7 = vsub.f32 %v1726_v49, %v566_v62  ;;  %v130_v22 = vadd.s32 24, %v127_v44  ;;  %v129_v43 = vadd.s32 16, %v127_v44 }
 0x3df   :  { %2484 = vtanh.f32 %v587_v3  ;;  %v585_v1 = vadd.f32 %v581_v6, %v577_v38  ;;  %vm2917_vm3 = vcmp.ne.s32.totalorder %v135_v18, 0  ;;  %v142_v34 = vand.u32 15, %v128_v21 }
 0x3e0   :  { %2486 = vtanh.f32 %v586_v40  ;;  %v584_v9 = vadd.f32 %v580_v8, %v576_v7  ;;  %v156_v37 = vand.u32 15, %v130_v22  ;;  %vm2930_vm6 = vmpackc.low %vm2661_vm5, %vm2917_vm3  ;;  %v149_v59 = vand.u32 15, %v129_v43 }
 0x3e1   :  { %v589_v10 = vmul.f32 0.5, %v585_v1  ;;  %vm2921_vm4 = vcmp.ne.s32.totalorder %v142_v34, 15 }
 0x3e2   :  { %v588_v13 = vmul.f32 0.5, %v584_v9  ;;  %vm1820_vm7 = vcmp.ne.s32.totalorder %v156_v37, 15  ;;  %vm2943_vm8 = vmpackc.low %vm2921_vm4, %vm2661_vm5  ;;  %vm1818_vm10 = vcmp.ne.s32.totalorder %v149_v59, 0 }
 0x3e3   :  { %2488 = vtanh.f32 %v589_v10  ;;  %vm2950_vm9 = vmpackc.low %vm1820_vm7, %vm2661_vm5 }
 0x3e4   :  { %2490 = vtanh.f32 %v588_v13  ;;  %vm2959_vm11 = vmpackc.low %vm2661_vm5, %vm1818_vm10 }
 0x3e9   :  { %v2485_v46 = vpop.eup %2484 }
 0x3ea   :  { %v2487_v14 = vpop.eup %2486  ;;  %v595_v17 = vmul.f32 0.5, %v2485_v46 }
 0x3eb   :  { %v594_v4 = vmul.f32 0.5, %v2487_v14 }
 0x3ec   :  { %v599_v24 = vadd.f32 0.5, %v595_v17 }
 0x3ed   :  { %v2489_v25 = vpop.eup %2488  ;;  %v598_v2 = vadd.f32 0.5, %v594_v4 }
 0x3ee   :  { %v2491_v27 = vpop.eup %2490  ;;  %v603_v28 = vmul.f32 %v599_v24, %v583_v61  ;;  %v597_v31 = vmul.f32 0.5, %v2489_v25 }
 0x3ef   :  { %v602_v35 = vmul.f32 %v598_v2, %v582_v63  ;;  %v596_v36 = vmul.f32 0.5, %v2491_v27 }
 0x3f0   :  { %v612_v39 = vrot.slane %v603_v28, 7  ;;  %v601_v41 = vadd.f32 0.5, %v597_v31  ;;  %v637_v42 = vrot.slane %v603_v28, 1 }
 0x3f1   :  { %v611_v45 = vrot.slane %v602_v35, 7  ;;  %v661_v47 = vpack.c.bf16 %v603_v28, %v602_v35  ;;  %v600_v48 = vadd.f32 0.5, %v596_v36  ;;  %v636_v49 = vrot.slane %v602_v35, 1 }
 0x3f2   :  { %v605_v50 = vmul.f32 %v601_v41, %v585_v1 }
 0x3f3   :  { %v613_v52 = vsel %vm610_vm1, %v611_v45, %v612_v39  ;;  %v622_v53 = vsel %vm610_vm1, 0.0, %v611_v45  ;;  %890 = vmatprep.mubr.bf16.mxu1 %v661_v47  ;;  %v604_v55 = vmul.f32 %v600_v48, %v584_v9  ;;  %v638_v56 = vsel %vm635_vm2, %v636_v49, %v637_v42 }
 0x3f4   :  { %v1753_v57 = vpack.c.bf16 %v613_v52, %v622_v53  ;;  %v641_v58 = vrot.slane %v605_v50, 1  ;;  %v616_v60 = vrot.slane %v605_v50, 7 }
 0x3f5   :  { %v664_v61 = vpack.c.bf16 %v605_v50, %v604_v55  ;;  %v639_v62 = vrot.slane %v604_v55, 1  ;;  %v614_v63 = vrot.slane %v604_v55, 7 }
 0x3f6   :  { %1754 = vmatmul.mubr.msk.bf16.vlgmr.msra.gmra.mrb[4].mxu1 %vm2930_vm6, %v1753_v57  ;;  %v647_v3 = vsel %vm635_vm2, %v641_v58, 0.0 }
 0x3f7   :  { %898 = vmatprep.mubr.bf16.mxu1 %v664_v61  ;;  %v640_v38 = vsel %vm635_vm2, %v637_v42, %v639_v62  ;;  %v642_v6 = vsel %vm635_vm2, %v639_v62, %v641_v58  ;;  %v615_v7 = vsel %vm610_vm1, %v612_v39, %v614_v63  ;;  %v617_v8 = vsel %vm610_vm1, %v614_v63, %v616_v60  ;;  %v2459_v63 = vld [vmem:[#allocation10 + $0x88] sm:$0xff]  }
 0x3f8   :  { %v1761_v1 = vpack.c.bf16 %v640_v38, %v638_v56  ;;  %v1765_v10 = vpack.c.bf16 %v647_v3, %v642_v6  ;;  %v1757_v0 = vpack.c.bf16 %v617_v8, %v615_v7  ;;  %v2460_v3 = vld [vmem:[#allocation10 + $0x58] sm:$0xff]   ;;  %v2462_v38 = vld [vmem:[#allocation10 + $0x90] sm:$0xff]   ;;  %v2463_v7 = vld [vmem:[#allocation10 + $0x60] sm:$0xff]  }
 0x3f9   :  { %v2461_v6 = vld [vmem:[#allocation10 + $0x18] sm:$0xff]  }
 0x3fa   :  { %2129 = vmatprep.mubr.msk.bf16.mxu0 %vm2943_vm8, %v1761_v1  ;;  %v2465_v8 = vld [vmem:[#allocation10 + $0x98] sm:$0xff]   ;;  %v2464_v1 = vld [vmem:[#allocation10 + $0x20] sm:$0xff]  }
 0x3fb   :  { %2130 = vmatmul.mubr.msk.bf16.vlgmr.msra.gmra.mrb[12].mxu0 %vm2950_vm9, %v1765_v10  ;;  %v2466_v10 = vld [vmem:[#allocation10 + $0x68] sm:$0xff]  }
 0x3fc   :  { %2348 = vmatpush3.bf16.msra.mxu0 %v2818_v11 }
 0x3fd   :  { %2350 = vmatprep.subr.bf16.mxu0 %v2820_v12 }
 0x3fe   :  { %1758 = vmatmul.mubr.msk.bf16.gmra.mrb[8].mxu1 %vm2959_vm11, %v1757_v0  ;;  %v2468_v0 = vld [vmem:[#allocation10 + $0xa0] sm:$0xff]  }
 0x3ff   :  { %2141 = vmatprep.mubr.msk.f32.mxu1 %vm189_vm0, %v2812_v5 }
 0x400   :  { %2352 = vmatpush3.bf16.msra.mxu0 %v2820_v12 }
 0x401   :  { %2354 = vmatprep.subr.bf16.mxu0 %v2829_v19 }
 0x404   :  { %2356 = vmatpush3.bf16.msra.mxu0 %v2829_v19 }
 0x405   :  { %2358 = vmatprep.subr.bf16.mxu0 %v2839_v23 }
 0x408   :  { %2360 = vmatpush3.bf16.msra.mxu0 %v2839_v23 }
 0x409   :  { %2362 = vmatprep.subr.bf16.mxu0 %v2845_v26 }
 0x40c   :  { %2364 = vmatpush3.bf16.msra.mxu0 %v2845_v26 }
 0x40d   :  { %2366 = vmatprep.subr.bf16.mxu0 %v2851_v29 }
 0x410   :  { %2368 = vmatpush3.bf16.msra.mxu0 %v2851_v29 }
 0x411   :  { %2370 = vmatprep.subr.bf16.mxu0 %v2855_v32 }
 0x414   :  { %2372 = vmatpush3.bf16.msra.mxu0 %v2855_v32 }
 0x415   :  { %2374 = vmatprep.subr.bf16.mxu0 %v2859_v33 }
 0x418   :  { %2376 = vmatpush3.bf16.msra.mxu0 %v2859_v33 }
 0x4c9   :  { %v1893_v44 = vpop.f32.mrb[4].mxu1 }
 0x4ca   :  { %v1894_v46 = vpop.f32.mrb[5].mxu1 }
 0x4cb   :  { %v1895_v14 = vadd.f32 %v1894_v46, %v1893_v44  ;;  %v1896_v17 = vpop.f32.mrb[6].mxu1  ;;  %v2467_v44 = vld [vmem:[#allocation10 + $0x28] sm:$0xff]   ;;  %v2469_v46 = vld [vmem:[#allocation10 + $0x70] sm:$0xff]  }
 0x4cc   :  { %v1897_v18 = vpop.f32.mrb[7].mxu1 }
 0x4cd   :  { %v1898_v21 = vadd.f32 %v1897_v18, %v1896_v17  ;;  %v2470_v17 = vld [vmem:[#allocation10 + $0x30] sm:$0xff]   ;;  %v2472_v18 = vld [vmem:[#allocation10 + $0x78] sm:$0xff]  }
 0x4ce   :  { %v2131_v4 = vpop.f32.mrb[12].mxu0 }
 0x4cf   :  { %v941_v22 = vpop.f32.mrb[13].mxu0 }
 0x4d0   :  { %v2982_v24 = vadd.f32 %v1895_v14, %v941_v22  ;;  %v2132_v25 = vpop.f32.mrb[14].mxu0  ;;  %v2471_v14 = vld [vmem:[#allocation10 + $0xa8] sm:$0xff]   ;;  %v2475_v22 = vld [vmem:[#allocation10 + $0xb8] sm:$0xff]  }
 0x4d1   :  { %v1899_v2 = vpop.f32.mrb[8].mxu1  ;;  %v944_v27 = vpop.f32.mrb[15].mxu0 }
 0x4d2   :  { %v2984_v28 = vadd.f32 %v1898_v21, %v944_v27  ;;  %v1900_v30 = vpop.f32.mrb[9].mxu1  ;;  %v2473_v21 = vld [vmem:[#allocation10 + $0x38] sm:$0xff]  }
 0x4d3   :  { %v1901_v31 = vadd.f32 %v1900_v30, %v1899_v2  ;;  %v1902_v34 = vpop.f32.mrb[10].mxu1 }
 0x4d4   :  { %v1903_v35 = vpop.f32.mrb[11].mxu1  ;;  %v2337_v36 = vpack.c.bf16 %v2984_v28, %v2982_v24 }
 0x4d5   :  { %v2988_v37 = vadd.f32 %v2131_v4, %v1901_v31  ;;  %v1904_v39 = vadd.f32 %v1903_v35, %v1902_v34  ;;  %v2474_v4 = vld [vmem:[#allocation10 + $0xb0] sm:$0xff]  }
 0x4d6   :  { %2338 = vmatprep.subr.bf16.mxu1 %v2337_v36 }
 0x4d7   :  { %v2990_v41 = vadd.f32 %v2132_v25, %v1904_v39  ;;  %2340 = vmatpush3.bf16.msra.mxu1 %v2337_v36  ;;  %v1775_v39 = vld [vmem:[%s3088_s3] ss:$0 sm:$0xff]  ;;  %s2662_s3 = smov [#allocation11]  }
 0x4d9   :  { %v2341_v42 = vpack.c.bf16 %v2990_v41, %v2988_v37 }
 0x4db   :  { %2342 = vmatprep.subr.bf16.mxu1 %v2341_v42 }
 0x4dc   :  { %2344 = vmatpush3.bf16.msra.mxu1 %v2341_v42 }
 0x4df   :  { %2142 = vmatmul.mubr.msk.f32.vlgmr.msra.gmra.mrb[12].mxu1 %vm189_vm0, %v2822_v15 }
 0x4e0   :  { %2144 = vmatprep.mubr.msk.f32.mxu1 %vm189_vm0, %v2825_v16 }
 0x4e3   :  { %2145 = vmatmul.mubr.msk.f32.gmra.mrb[14].mxu1 %vm189_vm0, %v2831_v20 }
 0x4e4   :  { %2193 = vmatprep.mubr.msk.f32.mxu1 %vm189_vm0, %v2812_v5 }
 0x5b2   :  { %v2143_v43 = vpop.f32.mrb[12].mxu1 }
 0x5b3   :  { %v1024_v45 = vpop.f32.mrb[13].mxu1 }
 0x5b4   :  { %2179 = vmatprep.mubr.f32.mxu0 %v1024_v45 }
 0x5b5   :  { %2180 = vmatmul.mubr.f32.vlgmr.msra.gmra.mrb[16].mxu0 %v2143_v43 }
 0x5b6   :  { %v2146_v47 = vpop.f32.mrb[14].mxu1 }
 0x5b7   :  { %v1034_v48 = vpop.f32.mrb[15].mxu1 }
 0x5b8   :  { %2182 = vmatprep.mubr.f32.mxu0 %v1034_v48  ;;  %v1776_v48 = vld [vmem:[%s3089_s4] ss:$0 sm:$0xff]  ;;  %s1703_s4 = sshll.u32 %s2662_s3, 4  ;;  %s1704_s4 = int_to_ptr.vmem [resolvable:$true] %s1703_s4 }
 0x5b9   :  { %2183 = vmatmul.mubr.f32.gmra.mrb[18].mxu0 %v2146_v47  ;;  %s2622_s15 = scalar_lea.vmem %s1704_s4, 512  ;;  %p2627_p13 = scmp.lt.s32.totalorder %s1704_s4, %s1704_s4 }
 0x5ba   :  { %p2623_p12 = scmp.ne.s32.totalorder %s1704_s4, %s2622_s15  ;;  %p2628_p0 = scmp.lt.s32.totalorder %s2622_s15, %s2622_s15 }
 0x5bc   :  { %p2629_p1 = por %p2628_p0, %p2627_p13 }
 0x5be   :  { %p2630_p2 = pnand %p2629_p1, %p2623_p12 }
 0x688   :  { %v3002_v49 = vpop.f32.mrb[16].mxu0 }
 0x689   :  { %v1129_v50 = vsub.f32 %v2984_v28, %v3002_v49  ;;  %v3006_v51 = vpop.f32.mrb[17].mxu0 }
 0x68a   :  { %v1128_v52 = vsub.f32 %v2982_v24, %v3006_v51 }
 0x68b   :  { %v1133_v53 = vmul.f32 %v1129_v50, %v1129_v50 }
 0x68c   :  { %v1132_v5 = vmul.f32 %v1128_v52, %v1128_v52  ;;  %v3010_v55 = vpop.f32.mrb[18].mxu0 }
 0x68d   :  { %v1131_v56 = vsub.f32 %v2990_v41, %v3010_v55  ;;  %v3014_v57 = vpop.f32.mrb[19].mxu0 }
 0x68e   :  { %v1130_v58 = vsub.f32 %v2988_v37, %v3014_v57  ;;  %v2377_v59 = vpack.c.bf16 %v1133_v53, %v1132_v5 }
 0x68f   :  { %v1135_v60 = vmul.f32 %v1131_v56, %v1131_v56 }
 0x690   :  { %v1134_v61 = vmul.f32 %v1130_v58, %v1130_v58  ;;  %2378 = vmatprep.subr.bf16.mxu1 %v2377_v59 }
 0x691   :  { %2380 = vmatpush3.bf16.msra.mxu1 %v2377_v59 }
 0x692   :  { %v2381_v62 = vpack.c.bf16 %v1135_v60, %v1134_v61 }
 0x694   :  { %2382 = vmatprep.subr.bf16.mxu1 %v2381_v62 }
 0x695   :  { %2384 = vmatpush3.bf16.msra.mxu1 %v2381_v62 }
 0x696   :  { %2386 = vmatprep.subr.bf16.mxu1 %v2818_v11 }
 0x698   :  { %2194 = vmatmul.mubr.msk.f32.vlgmr.msra.gmra.mrb[16].mxu1 %vm189_vm0, %v2822_v15 }
 0x699   :  { %2196 = vmatprep.mubr.msk.f32.mxu1 %vm189_vm0, %v2825_v16  ;;  %2388 = vmatpush3.bf16.msra.mxu1 %v2818_v11 }
 0x69a   :  { %2390 = vmatprep.subr.bf16.mxu1 %v2820_v12 }
 0x69c   :  { %2197 = vmatmul.mubr.msk.f32.gmra.mrb[18].mxu1 %vm189_vm0, %v2831_v20  ;;  %v2453_v20 = vld [vmem:[#allocation10] sm:$0xff]  }
 0x69d   :  { %2392 = vmatpush3.bf16.msra.mxu1 %v2820_v12 }
 0x69e   :  { %2394 = vmatprep.subr.bf16.mxu1 %v2829_v19 }
 0x6a1   :  { %2396 = vmatpush3.bf16.msra.mxu1 %v2829_v19  ;;  %v2452_v19 = vld [vmem:[#allocation10 + $0x40] sm:$0xff]  }
 0x6a2   :  { %2398 = vmatprep.subr.bf16.mxu1 %v2839_v23  ;;  %1971 = vmatprep.subr.bf16.mxu0 %v2452_v19 }
 0x6a3   :  { %1972 = vmatpush3.bf16.msra.mxu0 %v2453_v20 }
 0x6a5   :  { %2400 = vmatpush3.bf16.msra.mxu1 %v2839_v23  ;;  %v2454_v23 = vld [vmem:[#allocation10 + $0x48] sm:$0xff]  }
 0x6a6   :  { %2402 = vmatprep.subr.bf16.mxu1 %v2845_v26  ;;  %1973 = vmatprep.subr.bf16.mxu0 %v2454_v23 }
 0x6a9   :  { %2404 = vmatpush3.bf16.msra.mxu1 %v2845_v26  ;;  %v2455_v26 = vld [vmem:[#allocation10 + $0x8] sm:$0xff]  }
 0x6aa   :  { %2406 = vmatprep.subr.bf16.mxu1 %v2851_v29  ;;  %1974 = vmatpush3.bf16.msra.mxu0 %v2455_v26 }
 0x6ad   :  { %2408 = vmatpush3.bf16.msra.mxu1 %v2851_v29  ;;  %v2456_v29 = vld [vmem:[#allocation10 + $0x80] sm:$0xff]  }
 0x6ae   :  { %2410 = vmatprep.subr.bf16.mxu1 %v2855_v32 }
 0x6b1   :  { %2412 = vmatpush3.bf16.msra.mxu1 %v2855_v32  ;;  %v2457_v32 = vld [vmem:[#allocation10 + $0x50] sm:$0xff]  }
 0x6b2   :  { %2414 = vmatprep.subr.bf16.mxu1 %v2859_v33  ;;  %1975 = vmatprep.subr.bf16.mxu0 %v2457_v32 }
 0x6b5   :  { %2416 = vmatpush3.bf16.msra.mxu1 %v2859_v33  ;;  %v2458_v33 = vld [vmem:[#allocation10 + $0x10] sm:$0xff]  }
 0x6b6   :  { %2237 = vmatprep.subr.bf16.mxu1 %v2456_v29  ;;  %1976 = vmatpush3.bf16.msra.mxu0 %v2458_v33 }
 0x6b7   :  { %1977 = vmatprep.subr.bf16.mxu0 %v2460_v3 }
 0x6ba   :  { %1978 = vmatpush3.bf16.msra.mxu0 %v2461_v6 }
 0x6bb   :  { %1979 = vmatprep.subr.bf16.mxu0 %v2463_v7 }
 0x6be   :  { %1980 = vmatpush3.bf16.msra.mxu0 %v2464_v1 }
 0x6bf   :  { %1981 = vmatprep.subr.bf16.mxu0 %v2466_v10 }
 0x6c2   :  { %1982 = vmatpush3.bf16.msra.mxu0 %v2467_v44 }
 0x6c3   :  { %1983 = vmatprep.subr.bf16.mxu0 %v2469_v46 }
 0x6c6   :  { %1984 = vmatpush3.bf16.msra.mxu0 %v2470_v17 }
 0x6c7   :  { %1985 = vmatprep.subr.bf16.mxu0 %v2472_v18 }
 0x6ca   :  { %1986 = vmatpush3.bf16.msra.mxu0 %v2473_v21 }
 0x76b   :  { %v2195_v11 = vpop.f32.mrb[16].mxu1 }
 0x76c   :  { %v1202_v12 = vpop.f32.mrb[17].mxu1 }
 0x76d   :  { %2231 = vmatprep.mubr.f32.mxu1 %v1202_v12 }
 0x76e   :  { %2232 = vmatmul.mubr.f32.vlgmr.msra.gmra.mrb[20].mxu1 %v2195_v11 }
 0x76f   :  { %v2198_v15 = vpop.f32.mrb[18].mxu1  ;;  %2238 = vmatpush3.bf16.msra.mxu1 %v2456_v29 }
 0x770   :  { %v1212_v16 = vpop.f32.mrb[19].mxu1  ;;  %2239 = vmatprep.subr.bf16.mxu1 %v2459_v63 }
 0x771   :  { %2234 = vmatprep.mubr.f32.mxu1 %v1212_v16 }
 0x772   :  { %2235 = vmatmul.mubr.f32.gmra.mrb[22].mxu1 %v2198_v15 }
 0x773   :  { %2240 = vmatpush3.bf16.msra.mxu1 %v2459_v63 }
 0x774   :  { %2241 = vmatprep.subr.bf16.mxu1 %v2462_v38 }
 0x777   :  { %2242 = vmatpush3.bf16.msra.mxu1 %v2462_v38 }
 0x778   :  { %2243 = vmatprep.subr.bf16.mxu1 %v2465_v8 }
 0x77b   :  { %2244 = vmatpush3.bf16.msra.mxu1 %v2465_v8 }
 0x77c   :  { %2245 = vmatprep.subr.bf16.mxu1 %v2468_v0 }
 0x77f   :  { %2246 = vmatpush3.bf16.msra.mxu1 %v2468_v0 }
 0x780   :  { %2247 = vmatprep.subr.bf16.mxu1 %v2471_v14 }
 0x783   :  { %2248 = vmatpush3.bf16.msra.mxu1 %v2471_v14 }
 0x784   :  { %2249 = vmatprep.subr.bf16.mxu1 %v2474_v4 }
 0x787   :  { %2250 = vmatpush3.bf16.msra.mxu1 %v2474_v4 }
 0x788   :  { %2251 = vmatprep.subr.bf16.mxu1 %v2475_v22 }
 0x78b   :  { %2252 = vmatpush3.bf16.msra.mxu1 %v2475_v22 }
 0x841   :  { %v2233_v25 = vpop.f32.mrb[20].mxu1 }
 0x842   :  { %v1293_v2 = vadd.f32 1e-06, %v2233_v25  ;;  %v1287_v27 = vpop.f32.mrb[21].mxu1 }
 0x843   :  { %v1288_v30 = vadd.f32 1e-06, %v1287_v27 }
 0x844   :  { %2492 = vrsqrt.f32 %v1293_v2 }
 0x845   :  { %2494 = vrsqrt.f32 %v1288_v30  ;;  %v2236_v31 = vpop.f32.mrb[22].mxu1 }
 0x846   :  { %v1303_v34 = vadd.f32 1e-06, %v2236_v31  ;;  %v1297_v35 = vpop.f32.mrb[23].mxu1 }
 0x847   :  { %v1298_v36 = vadd.f32 1e-06, %v1297_v35 }
 0x848   :  { %2496 = vrsqrt.f32 %v1303_v34 }
 0x849   :  { %2498 = vrsqrt.f32 %v1298_v36 }
 0x84e   :  { %v2493_v42 = vpop.eup %2492 }
 0x84f   :  { %v2495_v43 = vpop.eup %2494  ;;  %v1317_v45 = vmul.f32 %v2493_v42, %v1775_v39 }
 0x850   :  { %v1316_v47 = vmul.f32 %v2495_v43, %v1775_v39 }
 0x851   :  { %v1321_v50 = vmul.f32 %v3002_v49, %v1317_v45  ;;  %v1335_v59 = vmul.f32 %v1317_v45, %v2984_v28 }
 0x852   :  { %v2497_v52 = vpop.eup %2496  ;;  %v1320_v53 = vmul.f32 %v1316_v47, %v3006_v51  ;;  %v1334_v62 = vmul.f32 %v1316_v47, %v2982_v24 }
 0x853   :  { %v2499_v5 = vpop.eup %2498  ;;  %v1319_v56 = vmul.f32 %v2497_v52, %v1775_v39  ;;  %v1331_v58 = vsub.f32 %v1776_v48, %v1321_v50 }
 0x854   :  { %v1318_v60 = vmul.f32 %v2499_v5, %v1775_v39  ;;  %v1330_v61 = vsub.f32 %v1776_v48, %v1320_v53 }
 0x855   :  { %v1323_v11 = vmul.f32 %v3010_v55, %v1319_v56  ;;  %v1339_v12 = vadd.f32 %v1335_v59, %v1331_v58  ;;  %v1337_v20 = vmul.f32 %v1319_v56, %v2990_v41 }
 0x856   :  { %v1322_v15 = vmul.f32 %v1318_v60, %v3014_v57  ;;  %v1338_v16 = vadd.f32 %v1334_v62, %v1330_v61  ;;  %v1336_v26 = vmul.f32 %v1318_v60, %v2988_v37  ;;  %v2508_v60 = vld [vmem:[#allocation2] sm:$0xff] }
 0x857   :  { %v1343_v19 = vmul.f32 0.5, %v1339_v12  ;;  %v1333_v49 = vsub.f32 %v1776_v48, %v1323_v11 }
 0x858   :  { %v1342_v51 = vmul.f32 0.5, %v1338_v16  ;;  %v1332_v23 = vsub.f32 %v1776_v48, %v1322_v15 }
 0x859   :  { %2500 = vtanh.f32 %v1343_v19  ;;  %v1341_v28 = vadd.f32 %v1337_v20, %v1333_v49 }
 0x85a   :  { %2502 = vtanh.f32 %v1342_v51  ;;  %v1340_v29 = vadd.f32 %v1336_v26, %v1332_v23  ;;  %v2510_v26 = vld [vmem:[#allocation2 + $0x10] sm:$0xff] }
 0x85b   :  { %v1345_v32 = vmul.f32 0.5, %v1341_v28 }
 0x85c   :  { %v1344_v24 = vmul.f32 0.5, %v1340_v29 }
 0x85d   :  { %2504 = vtanh.f32 %v1345_v32 }
 0x85e   :  { %2506 = vtanh.f32 %v1344_v24  ;;  %v2511_v24 = vld [vmem:[#allocation2 + $0x18] sm:$0xff] }
 0x863   :  { %v2501_v55 = vpop.eup %2500 }
 0x864   :  { %v2503_v33 = vpop.eup %2502  ;;  %v1351_v57 = vmul.f32 0.5, %v2501_v55 }
 0x865   :  { %v1350_v63 = vmul.f32 0.5, %v2503_v33 }
 0x866   :  { %v1355_v3 = vadd.f32 0.5, %v1351_v57 }
 0x867   :  { %v2505_v38 = vpop.eup %2504  ;;  %v1354_v6 = vadd.f32 0.5, %v1350_v63 }
 0x868   :  { %v2507_v41 = vpop.eup %2506  ;;  %v1359_v7 = vmul.f32 %v1355_v3, %v1339_v12  ;;  %v1353_v8 = vmul.f32 0.5, %v2505_v38  ;;  %v2509_v12 = vld [vmem:[#allocation2 + $0x8] sm:$0xff] }
 0x869   :  { %v1358_v1 = vmul.f32 %v1354_v6, %v1338_v16  ;;  %v1352_v37 = vmul.f32 0.5, %v2507_v41 }
 0x86a   :  { %v1367_v10 = vrot.slane %v1359_v7, 7  ;;  %v1357_v0 = vadd.f32 0.5, %v1353_v8  ;;  %v1383_v44 = vrot.slane %v1359_v7, 1 }
 0x86b   :  { %v1366_v46 = vrot.slane %v1358_v1, 7  ;;  %v1399_v14 = vpack.c.bf16 %v1359_v7, %v1358_v1  ;;  %v1356_v17 = vadd.f32 0.5, %v1352_v37  ;;  %v1382_v18 = vrot.slane %v1358_v1, 1 }
 0x86c   :  { %v1361_v21 = vmul.f32 %v1357_v0, %v1341_v28 }
 0x86d   :  { %v1368_v4 = vsel %vm610_vm1, %v1366_v46, %v1367_v10  ;;  %v1377_v22 = vsel %vm610_vm1, 0.0, %v1366_v46  ;;  %1628 = vmatprep.mubr.bf16.mxu0 %v1399_v14  ;;  %v1360_v25 = vmul.f32 %v1356_v17, %v1340_v29  ;;  %v1384_v2 = vsel %vm635_vm2, %v1382_v18, %v1383_v44 }
 0x86e   :  { %v1803_v27 = vpack.c.bf16 %v1368_v4, %v1377_v22  ;;  %v1387_v30 = vrot.slane %v1361_v21, 1  ;;  %v1371_v31 = vrot.slane %v1361_v21, 7 }
 0x86f   :  { %v1402_v34 = vpack.c.bf16 %v1361_v21, %v1360_v25  ;;  %v1385_v35 = vrot.slane %v1360_v25, 1  ;;  %v1369_v36 = vrot.slane %v1360_v25, 7 }
 0x870   :  { %1804 = vmatmul.mubr.msk.bf16.vlgmr.msra.gmra.mrb[20].mxu0 %vm2930_vm6, %v1803_v27  ;;  %v1393_v39 = vsel %vm635_vm2, %v1387_v30, 0.0 }
 0x871   :  { %1636 = vmatprep.mubr.bf16.mxu0 %v1402_v34  ;;  %v1386_v42 = vsel %vm635_vm2, %v1383_v44, %v1385_v35  ;;  %v1388_v43 = vsel %vm635_vm2, %v1385_v35, %v1387_v30  ;;  %v1370_v45 = vsel %vm610_vm1, %v1367_v10, %v1369_v36  ;;  %v1372_v47 = vsel %vm610_vm1, %v1369_v36, %v1371_v31 }
 0x872   :  { %v1811_v48 = vpack.c.bf16 %v1386_v42, %v1384_v2  ;;  %v1815_v50 = vpack.c.bf16 %v1393_v39, %v1388_v43  ;;  %v1807_v52 = vpack.c.bf16 %v1372_v47, %v1370_v45 }
 0x874   :  { %2253 = vmatprep.mubr.msk.bf16.mxu1 %vm2943_vm8, %v1811_v48 }
 0x875   :  { %2254 = vmatmul.mubr.msk.bf16.vlgmr.msra.gmra.mrb[24].mxu1 %vm2950_vm9, %v1815_v50 }
 0x878   :  { %1808 = vmatmul.mubr.msk.bf16.gmra.mrb[24].mxu0 %vm2959_vm11, %v1807_v52 }
 0x943   :  { %v1987_v54 = vpop.f32.mrb[20].mxu0 }
 0x944   :  { %v1988_v53 = vpop.f32.mrb[21].mxu0 }
 0x945   :  { %v1989_v5 = vadd.f32 %v1988_v53, %v1987_v54  ;;  %v1990_v56 = vpop.f32.mrb[22].mxu0 }
 0x946   :  { %v1991_v58 = vpop.f32.mrb[23].mxu0 }
 0x947   :  { %v1992_v59 = vadd.f32 %v1991_v58, %v1990_v56  ;;  %v1631_v61 = vadd.f32 %v2508_v60, %v1989_v5 }
 0x948   :  { %v2255_v62 = vpop.f32.mrb[24].mxu1 }
 0x949   :  { %v1679_v11 = vpop.f32.mrb[25].mxu1  ;;  %v1634_v15 = vadd.f32 %v2509_v12, %v1992_v59 }
 0x94a   :  { %v1680_v40 = vadd.f32 %v1679_v11, %v1631_v61  ;;  %v2256_v16 = vpop.f32.mrb[26].mxu1 }
 0x94b   :  { %v1993_v19 = vpop.f32.mrb[24].mxu0  ;;  %v1682_v9 = vpop.f32.mrb[27].mxu1 }
 0x94c   :  { %1694 = vst [vmem:[#allocation11] sm:$0xff] %v1680_v40  ;;  %v1683_v49 = vadd.f32 %v1682_v9, %v1634_v15  ;;  %v1994_v13 = vpop.f32.mrb[25].mxu0 }
 0x94d   :  { %v1995_v20 = vadd.f32 %v1994_v13, %v1993_v19  ;;  %v1996_v51 = vpop.f32.mrb[26].mxu0 }
 0x94e   :  { %1695 = vst [vmem:[#allocation11 + $0x8] sm:$0xff] %v1683_v49  ;;  %v1997_v23 = vpop.f32.mrb[27].mxu0 }
 0x94f   :  { %v1639_v28 = vadd.f32 %v2510_v26, %v1995_v20  ;;  %v1998_v29 = vadd.f32 %v1997_v23, %v1996_v51 }
 0x951   :  { %v1688_v32 = vadd.f32 %v2255_v62, %v1639_v28  ;;  %v1642_v55 = vadd.f32 %v2511_v24, %v1998_v29 }
 0x953   :  { %1696 = vst [vmem:[#allocation11 + $0x10] sm:$0xff] %v1688_v32  ;;  %v1691_v33 = vadd.f32 %v2256_v16, %v1642_v55 }
 0x955   :  { %1697 = vst [vmem:[#allocation11 + $0x18] sm:$0xff] %v1691_v33 }
 0x956   :  { %2633 = shalt.err (!%p2630_p2)
}
 0x957   :  { %s2634_s20 = scalar_lea.hbm %s3094_s9, 512 }
 0x958   :  { %p2635_p3 = scmp.ne.s32.totalorder %s3094_s9, %s2634_s20  ;;  %p2638_p4 = scmp.lt.u32.totalorder %s2634_s20, %s3094_s9 }
 0x95a   :  { %p2640_p5 = pnand %p2638_p4, %p2635_p3 }
 0x95c   :  { %2643 = shalt.err (!%p2640_p5)
}
 0x95d   :  { %1709 = dma.vmem_to_hbm [thread:$0]  %s1704_s4, 512, %s3094_s9, [#allocation4], %s2654_s21, %s2654_s21, %s2655_s22  }
 0x95e   :  { %2650 = dma.done.wait [#allocation4], 512  }
 0x95f   :  { %2651 = vsyncadd [#allocation4], 4294966784 }
 0x960   :  { %1713 = vsyncpa [#allocation3], 1 }
 0x961   :  { %1714 = vsyncpa [#allocation6], 1 }
 0x962   :  { %1715 = vsyncpa [#allocation9], 1 }
 0x963   :  { %1716 = vsyncpa [#allocation4], 1 }

</bundles_post_ra>
